<compile_context>
chip_gen: v7x
topology: tpu7x:2x2x1
jax: 0.10.0
libtpu: 0.0.40
codegen_flags: <defaults>
</compile_context>

<pallas_src>
import functools

import jax
import jax.numpy as jnp
from jax import lax
from jax.experimental import pallas as pl
from jax.experimental.pallas import tpu as pltpu


def _lstm_kernel(x_ref, wih_ref, whh_ref, b_ref, h0_ref, c0_ref,
                 h_out_ref, c_out_ref, gx_ref, *, seq_len, batch, hidden_dim):
    T, Bp, H = seq_len, batch, hidden_dim

    # ---- Prologue (off the serial critical path) ----------------------------
    # One big matmul for the whole input projection, bias folded in:
    #   gx[t*Bp + b, :] = x[t, b, :] @ W_ih^T + (b_ih + b_hh)
    gx_ref[...] = (
        jnp.dot(x_ref[...], wih_ref[...], preferred_element_type=jnp.float32)
        + b_ref[...]
    )

    whh = whh_ref[...]                       # (H, 4H), hoisted out of the loop
    # Lane mask selecting the "g" (cell-candidate) gate: lanes [2H, 3H).
    lane = lax.broadcasted_iota(jnp.int32, (Bp, 4 * H), 1)
    g_mask = (lane >= 2 * H) & (lane < 3 * H)

    # ---- Serial recurrence, fully unrolled in-kernel ------------------------
    def step(t, carry):
        h_prev, c_prev = carry
        row = pl.multiple_of(t * Bp, Bp)
        gates = (
            jnp.dot(h_prev, whh, preferred_element_type=jnp.float32)
            + gx_ref[pl.ds(row, Bp), :]
        )                                    # (Bp, 4H), gate order i, f, g, o
        # Fused full-width activations (EUP slot) + single select.
        act = jnp.where(g_mask, jnp.tanh(gates), jax.nn.sigmoid(gates))
        i_g = act[:, 0 * H:1 * H]
        f_g = act[:, 1 * H:2 * H]
        g_g = act[:, 2 * H:3 * H]
        o_g = act[:, 3 * H:4 * H]
        c_new = f_g * c_prev + i_g * g_g
        h_new = o_g * jnp.tanh(c_new)
        return h_new, c_new

    h_fin, c_fin = lax.fori_loop(0, T, step, (h0_ref[...], c0_ref[...]),
                                 unroll=True)
    h_out_ref[...] = h_fin
    c_out_ref[...] = c_fin


def traj_enc_lstm_forward(traj_data, hidden, params):
    """Pallas implementation of Traj_Enc_LSTM.forward.

    traj_data: (T, B, E) float32
    hidden:    tuple (h0, c0), each (1, B, H)
    params:    dict with weight_ih (4H, E), weight_hh (4H, H),
               bias_ih (4H,), bias_hh (4H,)
    returns:   (h_n, c_n), each (1, B, H)
    """
    T, B, E = traj_data.shape
    h0, c0 = hidden
    H = h0.shape[-1]

    if T == 0:
        # Empty sequence: state is returned unchanged (avoids uninit outputs).
        return h0, c0

    # Pad batch to a full sublane group (multiple of 8): free at B=2 and
    # removes masked sub-tile loads/stores on the (B, H) recurrent state.
    Bp = ((B + 7) // 8) * 8

    # Glue / layout plumbing (all off the kernel's critical path).
    wih_t = jnp.transpose(params["weight_ih"]).astype(jnp.float32)   # (E, 4H)
    whh_t = jnp.transpose(params["weight_hh"]).astype(jnp.float32)   # (H, 4H)
    bias = (params["bias_ih"] + params["bias_hh"]).reshape(1, 4 * H)
    bias = bias.astype(jnp.float32)
    # NOTE: on v6e/v7x, wih_t/whh_t could be cast to bf16 here (accumulation
    # stays f32 via preferred_element_type); kept f32 to match nn.LSTM numerics.

    x = traj_data.astype(jnp.float32)
    h0_2d = h0.reshape(B, H).astype(jnp.float32)
    c0_2d = c0.reshape(B, H).astype(jnp.float32)
    if Bp != B:
        x = jnp.pad(x, ((0, 0), (0, Bp - B), (0, 0)))
        h0_2d = jnp.pad(h0_2d, ((0, Bp - B), (0, 0)))
        c0_2d = jnp.pad(c0_2d, ((0, Bp - B), (0, 0)))
    x2d = x.reshape(T * Bp, E)               # time-major rows: index t*Bp + b

    kernel = functools.partial(_lstm_kernel, seq_len=T, batch=Bp, hidden_dim=H)

    h_n, c_n = pl.pallas_call(
        kernel,
        out_shape=(
            jax.ShapeDtypeStruct((Bp, H), jnp.float32),
            jax.ShapeDtypeStruct((Bp, H), jnp.float32),
        ),
        grid_spec=pltpu.PrefetchScalarGridSpec(
            num_scalar_prefetch=0,
            grid=(1,),                       # single step; recurrence in-kernel
            in_specs=[
                pl.BlockSpec((T * Bp, E), lambda i: (0, 0)),      # x (flat)
                pl.BlockSpec((E, 4 * H), lambda i: (0, 0)),       # W_ih^T
                pl.BlockSpec((H, 4 * H), lambda i: (0, 0)),       # W_hh^T
                pl.BlockSpec((1, 4 * H), lambda i: (0, 0)),       # folded bias
                pl.BlockSpec((Bp, H), lambda i: (0, 0)),          # h0
                pl.BlockSpec((Bp, H), lambda i: (0, 0)),          # c0
            ],
            out_specs=[
                pl.BlockSpec((Bp, H), lambda i: (0, 0)),          # h_n
                pl.BlockSpec((Bp, H), lambda i: (0, 0)),          # c_n
            ],
            scratch_shapes=[
                pltpu.VMEM((T * Bp, 4 * H), jnp.float32),         # precomputed x-gates
            ],
        ),
        compiler_params=pltpu.CompilerParams(
            dimension_semantics=("arbitrary",),
        ),
    )(x2d, wih_t, whh_t, bias, h0_2d, c0_2d)

    return h_n[:B].reshape(1, B, H), c_n[:B].reshape(1, B, H)


def _lstm_reference(traj_data, hidden, params):
    """Pure-JAX reference (PyTorch nn.LSTM semantics) for validation."""
    h0, c0 = hidden
    B, H = h0.shape[-2], h0.shape[-1]
    wih = params["weight_ih"]
    whh = params["weight_hh"]
    b = params["bias_ih"] + params["bias_hh"]

    def step(carry, x_t):
        h, c = carry
        gates = x_t @ wih.T + h @ whh.T + b
        i = jax.nn.sigmoid(gates[:, 0 * H:1 * H])
        f = jax.nn.sigmoid(gates[:, 1 * H:2 * H])
        g = jnp.tanh(gates[:, 2 * H:3 * H])
        o = jax.nn.sigmoid(gates[:, 3 * H:4 * H])
        c_new = f * c + i * g
        h_new = o * jnp.tanh(c_new)
        return (h_new, c_new), None

    (h_n, c_n), _ = jax.lax.scan(step, (h0.reshape(B, H), c0.reshape(B, H)),
                                 traj_data)
    return h_n.reshape(1, B, H), c_n.reshape(1, B, H)


if __name__ == "__main__":
    # Small, module-consistent shapes: seq=8, batch=2, emb_dim=hidden_dim=32.
    T, B, E, H = 8, 2, 32, 32

    key = jax.random.PRNGKey(0)
    k_x, k_h, k_c, k_wih, k_whh, k_bih, k_bhh = jax.random.split(key, 7)

    # Deterministic parameter init matching nn.LSTM's U(-1/sqrt(H), 1/sqrt(H)).
    bound = 1.0 / (H ** 0.5)
    params = {
        "weight_ih": jax.random.uniform(k_wih, (4 * H, E), jnp.float32, -bound, bound),
        "weight_hh": jax.random.uniform(k_whh, (4 * H, H), jnp.float32, -bound, bound),
        "bias_ih": jax.random.uniform(k_bih, (4 * H,), jnp.float32, -bound, bound),
        "bias_hh": jax.random.uniform(k_bhh, (4 * H,), jnp.float32, -bound, bound),
    }

    traj_data = jax.random.normal(k_x, (T, B, E), jnp.float32)
    h0 = jax.random.normal(k_h, (1, B, H), jnp.float32)
    c0 = jax.random.normal(k_c, (1, B, H), jnp.float32)

    h_n, c_n = traj_enc_lstm_forward(traj_data, (h0, c0), params)
    jax.block_until_ready((h_n, c_n))

    h_ref, c_ref = _lstm_reference(traj_data, (h0, c0), params)
    assert jnp.allclose(h_n, h_ref, atol=1e-5, rtol=1e-5)
    assert jnp.allclose(c_n, c_ref, atol=1e-5, rtol=1e-5)

    print("KERNEL_OK")
</pallas_src>

<mosaic_0001>
module attributes {stable_mosaic.version = 11 : i64} {
  func.func @_lstm_kernel(%arg0: i32, %arg1: memref<64x32xf32, #tpu.memory_space<vmem>>, %arg2: memref<32x128xf32, #tpu.memory_space<vmem>>, %arg3: memref<32x128xf32, #tpu.memory_space<vmem>>, %arg4: memref<1x128xf32, #tpu.memory_space<vmem>>, %arg5: memref<8x32xf32, #tpu.memory_space<vmem>>, %arg6: memref<8x32xf32, #tpu.memory_space<vmem>>, %arg7: memref<8x32xf32, #tpu.memory_space<vmem>>, %arg8: memref<8x32xf32, #tpu.memory_space<vmem>>, %arg9: memref<64x128xf32, #tpu.memory_space<vmem>>) attributes {dimension_semantics = [#tpu.dimension_semantics<arbitrary>], iteration_bounds = array<i64: 1>, scalar_prefetch = 0 : i64, scratch_operands = 1 : i64, tpu.core_type = #tpu.core_type<tc>, window_params = [{pipeline_mode = #tpu.pipeline_mode<synchronous>, transform_indices = @transform_0, window_bounds = array<i64: 64, 32>}, {pipeline_mode = #tpu.pipeline_mode<synchronous>, transform_indices = @transform_1, window_bounds = array<i64: 32, 128>}, {pipeline_mode = #tpu.pipeline_mode<synchronous>, transform_indices = @transform_2, window_bounds = array<i64: 32, 128>}, {pipeline_mode = #tpu.pipeline_mode<synchronous>, transform_indices = @transform_3, window_bounds = array<i64: 1, 128>}, {pipeline_mode = #tpu.pipeline_mode<synchronous>, transform_indices = @transform_4, window_bounds = array<i64: 8, 32>}, {pipeline_mode = #tpu.pipeline_mode<synchronous>, transform_indices = @transform_5, window_bounds = array<i64: 8, 32>}, {pipeline_mode = #tpu.pipeline_mode<synchronous>, transform_indices = @transform_6, window_bounds = array<i64: 8, 32>}, {pipeline_mode = #tpu.pipeline_mode<synchronous>, transform_indices = @transform_7, window_bounds = array<i64: 8, 32>}]} {
    %c0 = arith.constant 0 : index
    %c0_0 = arith.constant 0 : index
    %0 = vector.load %arg1[%c0, %c0_0] : memref<64x32xf32, #tpu.memory_space<vmem>>, vector<64x32xf32>
    %c0_1 = arith.constant 0 : index
    %c0_2 = arith.constant 0 : index
    %1 = vector.load %arg2[%c0_1, %c0_2] : memref<32x128xf32, #tpu.memory_space<vmem>>, vector<32x128xf32>
    %cst = arith.constant dense<0.000000e+00> : vector<64x128xf32>
    %2 = tpu.matmul %0, %1, %cst {dimension_numbers = #tpu.dot_dimension_numbers<[1], [0], [0], [1], [0, 0, 1, 1], [], []>} : vector<64x32xf32>, vector<32x128xf32>, vector<64x128xf32> -> vector<64x128xf32>
    %c0_3 = arith.constant 0 : index
    %c0_4 = arith.constant 0 : index
    %3 = vector.load %arg4[%c0_3, %c0_4] : memref<1x128xf32, #tpu.memory_space<vmem>>, vector<1x128xf32>
    %4 = vector.broadcast %3 : vector<1x128xf32> to vector<64x128xf32>
    %5 = arith.addf %2, %4 : vector<64x128xf32>
    %c0_5 = arith.constant 0 : index
    %c0_6 = arith.constant 0 : index
    %6 = vector.load %arg9[%c0_5, %c0_6] : memref<64x128xf32, #tpu.memory_space<vmem>>, vector<64x128xf32>
    tpu.vector_store %arg9[%c0_5, %c0_6], %5 {strides = array<i32>} : memref<64x128xf32, #tpu.memory_space<vmem>>, vector<64x128xf32>,
    %c0_7 = arith.constant 0 : index
    %c0_8 = arith.constant 0 : index
    %7 = vector.load %arg3[%c0_7, %c0_8] : memref<32x128xf32, #tpu.memory_space<vmem>>, vector<32x128xf32>
    %8 = tpu.iota {dimensions = array<i32: 1>} : vector<8x128xi32>
    %c64_i32 = arith.constant 64 : i32
    %9 = vector.broadcast %c64_i32 : i32 to vector<8x128xi32>
    %10 = arith.cmpi sge, %8, %9 : vector<8x128xi32>
    %c96_i32 = arith.constant 96 : i32
    %11 = vector.broadcast %c96_i32 : i32 to vector<8x128xi32>
    %12 = arith.cmpi slt, %8, %11 : vector<8x128xi32>
    %13 = arith.andi %10, %12 : vector<8x128xi1>
    %c0_9 = arith.constant 0 : index
    %c0_10 = arith.constant 0 : index
    %14 = vector.load %arg5[%c0_9, %c0_10] : memref<8x32xf32, #tpu.memory_space<vmem>>, vector<8x32xf32>
    %c0_11 = arith.constant 0 : index
    %c0_12 = arith.constant 0 : index
    %15 = vector.load %arg6[%c0_11, %c0_12] : memref<8x32xf32, #tpu.memory_space<vmem>>, vector<8x32xf32>
    %c0_i32 = arith.constant 0 : i32
    %c8_i32 = arith.constant 8 : i32
    %16 = arith.muli %c0_i32, %c8_i32 : i32
    %17 = tpu.assume_multiple %16, 8 : i32
    %cst_13 = arith.constant dense<0.000000e+00> : vector<8x128xf32>
    %18 = tpu.matmul %14, %7, %cst_13 {dimension_numbers = #tpu.dot_dimension_numbers<[1], [0], [0], [1], [0, 0, 1, 1], [], []>} : vector<8x32xf32>, vector<32x128xf32>, vector<8x128xf32> -> vector<8x128xf32>
    %19 = arith.index_cast %17 : i32 to index
    %c0_14 = arith.constant 0 : index
    %20 = vector.load %arg9[%19, %c0_14] : memref<64x128xf32, #tpu.memory_space<vmem>>, vector<8x128xf32>
    %21 = arith.addf %18, %20 : vector<8x128xf32>
    %22 = math.tanh %21 : vector<8x128xf32>
    %23 = arith.negf %21 : vector<8x128xf32>
    %24 = math.exp %23 : vector<8x128xf32>
    %cst_15 = arith.constant 1.000000e+00 : f32
    %25 = vector.broadcast %cst_15 : f32 to vector<8x128xf32>
    %26 = arith.addf %25, %24 : vector<8x128xf32>
    %27 = arith.divf %25, %26 : vector<8x128xf32>
    %28 = arith.select %13, %22, %27 : vector<8x128xi1>, vector<8x128xf32>
    %29 = vector.extract_strided_slice %28 {offsets = [0, 0], sizes = [8, 32], strides = [1, 1]} : vector<8x128xf32> to vector<8x32xf32>
    %30 = vector.extract_strided_slice %28 {offsets = [0, 32], sizes = [8, 32], strides = [1, 1]} : vector<8x128xf32> to vector<8x32xf32>
    %31 = vector.extract_strided_slice %28 {offsets = [0, 64], sizes = [8, 32], strides = [1, 1]} : vector<8x128xf32> to vector<8x32xf32>
    %32 = vector.extract_strided_slice %28 {offsets = [0, 96], sizes = [8, 32], strides = [1, 1]} : vector<8x128xf32> to vector<8x32xf32>
    %33 = arith.mulf %30, %15 : vector<8x32xf32>
    %34 = arith.mulf %29, %31 : vector<8x32xf32>
    %35 = arith.addf %33, %34 : vector<8x32xf32>
    %36 = math.tanh %35 : vector<8x32xf32>
    %37 = arith.mulf %32, %36 : vector<8x32xf32>
    %c1_i32 = arith.constant 1 : i32
    %c8_i32_16 = arith.constant 8 : i32
    %38 = arith.muli %c1_i32, %c8_i32_16 : i32
    %39 = tpu.assume_multiple %38, 8 : i32
    %cst_17 = arith.constant dense<0.000000e+00> : vector<8x128xf32>
    %40 = tpu.matmul %37, %7, %cst_17 {dimension_numbers = #tpu.dot_dimension_numbers<[1], [0], [0], [1], [0, 0, 1, 1], [], []>} : vector<8x32xf32>, vector<32x128xf32>, vector<8x128xf32> -> vector<8x128xf32>
    %41 = arith.index_cast %39 : i32 to index
    %c0_18 = arith.constant 0 : index
    %42 = vector.load %arg9[%41, %c0_18] : memref<64x128xf32, #tpu.memory_space<vmem>>, vector<8x128xf32>
    %43 = arith.addf %40, %42 : vector<8x128xf32>
    %44 = math.tanh %43 : vector<8x128xf32>
    %45 = arith.negf %43 : vector<8x128xf32>
    %46 = math.exp %45 : vector<8x128xf32>
    %cst_19 = arith.constant 1.000000e+00 : f32
    %47 = vector.broadcast %cst_19 : f32 to vector<8x128xf32>
    %48 = arith.addf %47, %46 : vector<8x128xf32>
    %49 = arith.divf %47, %48 : vector<8x128xf32>
    %50 = arith.select %13, %44, %49 : vector<8x128xi1>, vector<8x128xf32>
    %51 = vector.extract_strided_slice %50 {offsets = [0, 0], sizes = [8, 32], strides = [1, 1]} : vector<8x128xf32> to vector<8x32xf32>
    %52 = vector.extract_strided_slice %50 {offsets = [0, 32], sizes = [8, 32], strides = [1, 1]} : vector<8x128xf32> to vector<8x32xf32>
    %53 = vector.extract_strided_slice %50 {offsets = [0, 64], sizes = [8, 32], strides = [1, 1]} : vector<8x128xf32> to vector<8x32xf32>
    %54 = vector.extract_strided_slice %50 {offsets = [0, 96], sizes = [8, 32], strides = [1, 1]} : vector<8x128xf32> to vector<8x32xf32>
    %55 = arith.mulf %52, %35 : vector<8x32xf32>
    %56 = arith.mulf %51, %53 : vector<8x32xf32>
    %57 = arith.addf %55, %56 : vector<8x32xf32>
    %58 = math.tanh %57 : vector<8x32xf32>
    %59 = arith.mulf %54, %58 : vector<8x32xf32>
    %c2_i32 = arith.constant 2 : i32
    %c8_i32_20 = arith.constant 8 : i32
    %60 = arith.muli %c2_i32, %c8_i32_20 : i32
    %61 = tpu.assume_multiple %60, 8 : i32
    %cst_21 = arith.constant dense<0.000000e+00> : vector<8x128xf32>
    %62 = tpu.matmul %59, %7, %cst_21 {dimension_numbers = #tpu.dot_dimension_numbers<[1], [0], [0], [1], [0, 0, 1, 1], [], []>} : vector<8x32xf32>, vector<32x128xf32>, vector<8x128xf32> -> vector<8x128xf32>
    %63 = arith.index_cast %61 : i32 to index
    %c0_22 = arith.constant 0 : index
    %64 = vector.load %arg9[%63, %c0_22] : memref<64x128xf32, #tpu.memory_space<vmem>>, vector<8x128xf32>
    %65 = arith.addf %62, %64 : vector<8x128xf32>
    %66 = math.tanh %65 : vector<8x128xf32>
    %67 = arith.negf %65 : vector<8x128xf32>
    %68 = math.exp %67 : vector<8x128xf32>
    %cst_23 = arith.constant 1.000000e+00 : f32
    %69 = vector.broadcast %cst_23 : f32 to vector<8x128xf32>
    %70 = arith.addf %69, %68 : vector<8x128xf32>
    %71 = arith.divf %69, %70 : vector<8x128xf32>
    %72 = arith.select %13, %66, %71 : vector<8x128xi1>, vector<8x128xf32>
    %73 = vector.extract_strided_slice %72 {offsets = [0, 0], sizes = [8, 32], strides = [1, 1]} : vector<8x128xf32> to vector<8x32xf32>
    %74 = vector.extract_strided_slice %72 {offsets = [0, 32], sizes = [8, 32], strides = [1, 1]} : vector<8x128xf32> to vector<8x32xf32>
    %75 = vector.extract_strided_slice %72 {offsets = [0, 64], sizes = [8, 32], strides = [1, 1]} : vector<8x128xf32> to vector<8x32xf32>
    %76 = vector.extract_strided_slice %72 {offsets = [0, 96], sizes = [8, 32], strides = [1, 1]} : vector<8x128xf32> to vector<8x32xf32>
    %77 = arith.mulf %74, %57 : vector<8x32xf32>
    %78 = arith.mulf %73, %75 : vector<8x32xf32>
    %79 = arith.addf %77, %78 : vector<8x32xf32>
    %80 = math.tanh %79 : vector<8x32xf32>
    %81 = arith.mulf %76, %80 : vector<8x32xf32>
    %c3_i32 = arith.constant 3 : i32
    %c8_i32_24 = arith.constant 8 : i32
    %82 = arith.muli %c3_i32, %c8_i32_24 : i32
    %83 = tpu.assume_multiple %82, 8 : i32
    %cst_25 = arith.constant dense<0.000000e+00> : vector<8x128xf32>
    %84 = tpu.matmul %81, %7, %cst_25 {dimension_numbers = #tpu.dot_dimension_numbers<[1], [0], [0], [1], [0, 0, 1, 1], [], []>} : vector<8x32xf32>, vector<32x128xf32>, vector<8x128xf32> -> vector<8x128xf32>
    %85 = arith.index_cast %83 : i32 to index
    %c0_26 = arith.constant 0 : index
    %86 = vector.load %arg9[%85, %c0_26] : memref<64x128xf32, #tpu.memory_space<vmem>>, vector<8x128xf32>
    %87 = arith.addf %84, %86 : vector<8x128xf32>
    %88 = math.tanh %87 : vector<8x128xf32>
    %89 = arith.negf %87 : vector<8x128xf32>
    %90 = math.exp %89 : vector<8x128xf32>
    %cst_27 = arith.constant 1.000000e+00 : f32
    %91 = vector.broadcast %cst_27 : f32 to vector<8x128xf32>
    %92 = arith.addf %91, %90 : vector<8x128xf32>
    %93 = arith.divf %91, %92 : vector<8x128xf32>
    %94 = arith.select %13, %88, %93 : vector<8x128xi1>, vector<8x128xf32>
    %95 = vector.extract_strided_slice %94 {offsets = [0, 0], sizes = [8, 32], strides = [1, 1]} : vector<8x128xf32> to vector<8x32xf32>
    %96 = vector.extract_strided_slice %94 {offsets = [0, 32], sizes = [8, 32], strides = [1, 1]} : vector<8x128xf32> to vector<8x32xf32>
    %97 = vector.extract_strided_slice %94 {offsets = [0, 64], sizes = [8, 32], strides = [1, 1]} : vector<8x128xf32> to vector<8x32xf32>
    %98 = vector.extract_strided_slice %94 {offsets = [0, 96], sizes = [8, 32], strides = [1, 1]} : vector<8x128xf32> to vector<8x32xf32>
    %99 = arith.mulf %96, %79 : vector<8x32xf32>
    %100 = arith.mulf %95, %97 : vector<8x32xf32>
    %101 = arith.addf %99, %100 : vector<8x32xf32>
    %102 = math.tanh %101 : vector<8x32xf32>
    %103 = arith.mulf %98, %102 : vector<8x32xf32>
    %c4_i32 = arith.constant 4 : i32
    %c8_i32_28 = arith.constant 8 : i32
    %104 = arith.muli %c4_i32, %c8_i32_28 : i32
    %105 = tpu.assume_multiple %104, 8 : i32
    %cst_29 = arith.constant dense<0.000000e+00> : vector<8x128xf32>
    %106 = tpu.matmul %103, %7, %cst_29 {dimension_numbers = #tpu.dot_dimension_numbers<[1], [0], [0], [1], [0, 0, 1, 1], [], []>} : vector<8x32xf32>, vector<32x128xf32>, vector<8x128xf32> -> vector<8x128xf32>
    %107 = arith.index_cast %105 : i32 to index
    %c0_30 = arith.constant 0 : index
    %108 = vector.load %arg9[%107, %c0_30] : memref<64x128xf32, #tpu.memory_space<vmem>>, vector<8x128xf32>
    %109 = arith.addf %106, %108 : vector<8x128xf32>
    %110 = math.tanh %109 : vector<8x128xf32>
    %111 = arith.negf %109 : vector<8x128xf32>
    %112 = math.exp %111 : vector<8x128xf32>
    %cst_31 = arith.constant 1.000000e+00 : f32
    %113 = vector.broadcast %cst_31 : f32 to vector<8x128xf32>
    %114 = arith.addf %113, %112 : vector<8x128xf32>
    %115 = arith.divf %113, %114 : vector<8x128xf32>
    %116 = arith.select %13, %110, %115 : vector<8x128xi1>, vector<8x128xf32>
    %117 = vector.extract_strided_slice %116 {offsets = [0, 0], sizes = [8, 32], strides = [1, 1]} : vector<8x128xf32> to vector<8x32xf32>
    %118 = vector.extract_strided_slice %116 {offsets = [0, 32], sizes = [8, 32], strides = [1, 1]} : vector<8x128xf32> to vector<8x32xf32>
    %119 = vector.extract_strided_slice %116 {offsets = [0, 64], sizes = [8, 32], strides = [1, 1]} : vector<8x128xf32> to vector<8x32xf32>
    %120 = vector.extract_strided_slice %116 {offsets = [0, 96], sizes = [8, 32], strides = [1, 1]} : vector<8x128xf32> to vector<8x32xf32>
    %121 = arith.mulf %118, %101 : vector<8x32xf32>
    %122 = arith.mulf %117, %119 : vector<8x32xf32>
    %123 = arith.addf %121, %122 : vector<8x32xf32>
    %124 = math.tanh %123 : vector<8x32xf32>
    %125 = arith.mulf %120, %124 : vector<8x32xf32>
    %c5_i32 = arith.constant 5 : i32
    %c8_i32_32 = arith.constant 8 : i32
    %126 = arith.muli %c5_i32, %c8_i32_32 : i32
    %127 = tpu.assume_multiple %126, 8 : i32
    %cst_33 = arith.constant dense<0.000000e+00> : vector<8x128xf32>
    %128 = tpu.matmul %125, %7, %cst_33 {dimension_numbers = #tpu.dot_dimension_numbers<[1], [0], [0], [1], [0, 0, 1, 1], [], []>} : vector<8x32xf32>, vector<32x128xf32>, vector<8x128xf32> -> vector<8x128xf32>
    %129 = arith.index_cast %127 : i32 to index
    %c0_34 = arith.constant 0 : index
    %130 = vector.load %arg9[%129, %c0_34] : memref<64x128xf32, #tpu.memory_space<vmem>>, vector<8x128xf32>
    %131 = arith.addf %128, %130 : vector<8x128xf32>
    %132 = math.tanh %131 : vector<8x128xf32>
    %133 = arith.negf %131 : vector<8x128xf32>
    %134 = math.exp %133 : vector<8x128xf32>
    %cst_35 = arith.constant 1.000000e+00 : f32
    %135 = vector.broadcast %cst_35 : f32 to vector<8x128xf32>
    %136 = arith.addf %135, %134 : vector<8x128xf32>
    %137 = arith.divf %135, %136 : vector<8x128xf32>
    %138 = arith.select %13, %132, %137 : vector<8x128xi1>, vector<8x128xf32>
    %139 = vector.extract_strided_slice %138 {offsets = [0, 0], sizes = [8, 32], strides = [1, 1]} : vector<8x128xf32> to vector<8x32xf32>
    %140 = vector.extract_strided_slice %138 {offsets = [0, 32], sizes = [8, 32], strides = [1, 1]} : vector<8x128xf32> to vector<8x32xf32>
    %141 = vector.extract_strided_slice %138 {offsets = [0, 64], sizes = [8, 32], strides = [1, 1]} : vector<8x128xf32> to vector<8x32xf32>
    %142 = vector.extract_strided_slice %138 {offsets = [0, 96], sizes = [8, 32], strides = [1, 1]} : vector<8x128xf32> to vector<8x32xf32>
    %143 = arith.mulf %140, %123 : vector<8x32xf32>
    %144 = arith.mulf %139, %141 : vector<8x32xf32>
    %145 = arith.addf %143, %144 : vector<8x32xf32>
    %146 = math.tanh %145 : vector<8x32xf32>
    %147 = arith.mulf %142, %146 : vector<8x32xf32>
    %c6_i32 = arith.constant 6 : i32
    %c8_i32_36 = arith.constant 8 : i32
    %148 = arith.muli %c6_i32, %c8_i32_36 : i32
    %149 = tpu.assume_multiple %148, 8 : i32
    %cst_37 = arith.constant dense<0.000000e+00> : vector<8x128xf32>
    %150 = tpu.matmul %147, %7, %cst_37 {dimension_numbers = #tpu.dot_dimension_numbers<[1], [0], [0], [1], [0, 0, 1, 1], [], []>} : vector<8x32xf32>, vector<32x128xf32>, vector<8x128xf32> -> vector<8x128xf32>
    %151 = arith.index_cast %149 : i32 to index
    %c0_38 = arith.constant 0 : index
    %152 = vector.load %arg9[%151, %c0_38] : memref<64x128xf32, #tpu.memory_space<vmem>>, vector<8x128xf32>
    %153 = arith.addf %150, %152 : vector<8x128xf32>
    %154 = math.tanh %153 : vector<8x128xf32>
    %155 = arith.negf %153 : vector<8x128xf32>
    %156 = math.exp %155 : vector<8x128xf32>
    %cst_39 = arith.constant 1.000000e+00 : f32
    %157 = vector.broadcast %cst_39 : f32 to vector<8x128xf32>
    %158 = arith.addf %157, %156 : vector<8x128xf32>
    %159 = arith.divf %157, %158 : vector<8x128xf32>
    %160 = arith.select %13, %154, %159 : vector<8x128xi1>, vector<8x128xf32>
    %161 = vector.extract_strided_slice %160 {offsets = [0, 0], sizes = [8, 32], strides = [1, 1]} : vector<8x128xf32> to vector<8x32xf32>
    %162 = vector.extract_strided_slice %160 {offsets = [0, 32], sizes = [8, 32], strides = [1, 1]} : vector<8x128xf32> to vector<8x32xf32>
    %163 = vector.extract_strided_slice %160 {offsets = [0, 64], sizes = [8, 32], strides = [1, 1]} : vector<8x128xf32> to vector<8x32xf32>
    %164 = vector.extract_strided_slice %160 {offsets = [0, 96], sizes = [8, 32], strides = [1, 1]} : vector<8x128xf32> to vector<8x32xf32>
    %165 = arith.mulf %162, %145 : vector<8x32xf32>
    %166 = arith.mulf %161, %163 : vector<8x32xf32>
    %167 = arith.addf %165, %166 : vector<8x32xf32>
    %168 = math.tanh %167 : vector<8x32xf32>
    %169 = arith.mulf %164, %168 : vector<8x32xf32>
    %c7_i32 = arith.constant 7 : i32
    %c8_i32_40 = arith.constant 8 : i32
    %170 = arith.muli %c7_i32, %c8_i32_40 : i32
    %171 = tpu.assume_multiple %170, 8 : i32
    %cst_41 = arith.constant dense<0.000000e+00> : vector<8x128xf32>
    %172 = tpu.matmul %169, %7, %cst_41 {dimension_numbers = #tpu.dot_dimension_numbers<[1], [0], [0], [1], [0, 0, 1, 1], [], []>} : vector<8x32xf32>, vector<32x128xf32>, vector<8x128xf32> -> vector<8x128xf32>
    %173 = arith.index_cast %171 : i32 to index
    %c0_42 = arith.constant 0 : index
    %174 = vector.load %arg9[%173, %c0_42] : memref<64x128xf32, #tpu.memory_space<vmem>>, vector<8x128xf32>
    %175 = arith.addf %172, %174 : vector<8x128xf32>
    %176 = math.tanh %175 : vector<8x128xf32>
    %177 = arith.negf %175 : vector<8x128xf32>
    %178 = math.exp %177 : vector<8x128xf32>
    %cst_43 = arith.constant 1.000000e+00 : f32
    %179 = vector.broadcast %cst_43 : f32 to vector<8x128xf32>
    %180 = arith.addf %179, %178 : vector<8x128xf32>
    %181 = arith.divf %179, %180 : vector<8x128xf32>
    %182 = arith.select %13, %176, %181 : vector<8x128xi1>, vector<8x128xf32>
    %183 = vector.extract_strided_slice %182 {offsets = [0, 0], sizes = [8, 32], strides = [1, 1]} : vector<8x128xf32> to vector<8x32xf32>
    %184 = vector.extract_strided_slice %182 {offsets = [0, 32], sizes = [8, 32], strides = [1, 1]} : vector<8x128xf32> to vector<8x32xf32>
    %185 = vector.extract_strided_slice %182 {offsets = [0, 64], sizes = [8, 32], strides = [1, 1]} : vector<8x128xf32> to vector<8x32xf32>
    %186 = vector.extract_strided_slice %182 {offsets = [0, 96], sizes = [8, 32], strides = [1, 1]} : vector<8x128xf32> to vector<8x32xf32>
    %187 = arith.mulf %184, %167 : vector<8x32xf32>
    %188 = arith.mulf %183, %185 : vector<8x32xf32>
    %189 = arith.addf %187, %188 : vector<8x32xf32>
    %190 = math.tanh %189 : vector<8x32xf32>
    %191 = arith.mulf %186, %190 : vector<8x32xf32>
    %c8_i32_44 = arith.constant 8 : i32
    %c0_45 = arith.constant 0 : index
    %c0_46 = arith.constant 0 : index
    %192 = vector.load %arg7[%c0_45, %c0_46] : memref<8x32xf32, #tpu.memory_space<vmem>>, vector<8x32xf32>
    tpu.vector_store %arg7[%c0_45, %c0_46], %191 {strides = array<i32>} : memref<8x32xf32, #tpu.memory_space<vmem>>, vector<8x32xf32>,
    %c0_47 = arith.constant 0 : index
    %c0_48 = arith.constant 0 : index
    %193 = vector.load %arg8[%c0_47, %c0_48] : memref<8x32xf32, #tpu.memory_space<vmem>>, vector<8x32xf32>
    tpu.vector_store %arg8[%c0_47, %c0_48], %189 {strides = array<i32>} : memref<8x32xf32, #tpu.memory_space<vmem>>, vector<8x32xf32>,
    return
  }
  func.func @transform_0(%arg0: i32) -> (i32, i32) {
    %c0_i32 = arith.constant 0 : i32
    %c0_i32_0 = arith.constant 0 : i32
    %c0_i32_1 = arith.constant 0 : i32
    return %c0_i32, %c0_i32_0 : i32, i32
  }
  func.func @transform_1(%arg0: i32) -> (i32, i32) {
    %c0_i32 = arith.constant 0 : i32
    %c0_i32_0 = arith.constant 0 : i32
    %c0_i32_1 = arith.constant 0 : i32
    return %c0_i32, %c0_i32_0 : i32, i32
  }
  func.func @transform_2(%arg0: i32) -> (i32, i32) {
    %c0_i32 = arith.constant 0 : i32
    %c0_i32_0 = arith.constant 0 : i32
    %c0_i32_1 = arith.constant 0 : i32
    return %c0_i32, %c0_i32_0 : i32, i32
  }
  func.func @transform_3(%arg0: i32) -> (i32, i32) {
    %c0_i32 = arith.constant 0 : i32
    %c0_i32_0 = arith.constant 0 : i32
    %c0_i32_1 = arith.constant 0 : i32
    return %c0_i32, %c0_i32_0 : i32, i32
  }
  func.func @transform_4(%arg0: i32) -> (i32, i32) {
    %c0_i32 = arith.constant 0 : i32
    %c0_i32_0 = arith.constant 0 : i32
    %c0_i32_1 = arith.constant 0 : i32
    return %c0_i32, %c0_i32_0 : i32, i32
  }
  func.func @transform_5(%arg0: i32) -> (i32, i32) {
    %c0_i32 = arith.constant 0 : i32
    %c0_i32_0 = arith.constant 0 : i32
    %c0_i32_1 = arith.constant 0 : i32
    return %c0_i32, %c0_i32_0 : i32, i32
  }
  func.func @transform_6(%arg0: i32) -> (i32, i32) {
    %c0_i32 = arith.constant 0 : i32
    %c0_i32_0 = arith.constant 0 : i32
    %c0_i32_1 = arith.constant 0 : i32
    return %c0_i32, %c0_i32_0 : i32, i32
  }
  func.func @transform_7(%arg0: i32) -> (i32, i32) {
    %c0_i32 = arith.constant 0 : i32
    %c0_i32_0 = arith.constant 0 : i32
    %c0_i32_1 = arith.constant 0 : i32
    return %c0_i32, %c0_i32_0 : i32, i32
  }
}

</mosaic_0001>

<bundles_post_ra>
// kernel: tpu_custom_call.1
= control target key start
LH: loop header
LB: loop body
LE: loop exit
PB: predicated region body
PF: predicated region fallthrough
CT: control target
= control target key end

     0   :  { %13 = vsyncpa [#allocation4], 0  ;;  %vm46_vm0 = vcmask 261120   ;;  %v1411_v4 = vmov 0.0|0.0   ;;  %vm1412_vm1 = vmmov 0   ;;  %v1413_v13 = vmov 0.0   ;;  %s1685_s0 = inlined_call_operand.vmem [shape: f32[64,32], index: 0, kind: input, shape index: {}]   ;;  %s1686_s1 = inlined_call_operand.vmem [shape: f32[32,128], index: 1, kind: input, shape index: {}]   ;;  %s1687_s2 = inlined_call_operand.vmem [shape: f32[32,128], index: 2, kind: input, shape index: {}]   ;;  %s1688_s3 = inlined_call_operand.vmem [shape: f32[1,128], index: 3, kind: input, shape index: {}]   ;;  %s1689_s4 = inlined_call_operand.vmem [shape: f32[8,32], index: 4, kind: input, shape index: {}]   ;;  %s1690_s5 = inlined_call_operand.vmem [shape: f32[8,32], index: 5, kind: input, shape index: {}]   ;;  %s1691_s6 = inlined_call_operand.hbm [shape: f32[8,32], index: 6, kind: output, shape index: {0}]   ;;  %s1692_s7 = inlined_call_operand.hbm [shape: f32[8,32], index: 7, kind: output, shape index: {1}]  }
   0x1   :  { %v35_v0 = vld [vmem:[%s1686_s1] sm:$0xff]  ;;  %v36_v1 = vld [vmem:[%s1686_s1 + $0x8] sm:$0xff]  ;;  %1243 = vmatprep.subr.bf16.mxu1 %v1411_v4  ;;  %v37_v6 = vld [vmem:[%s1686_s1 + $0x10] sm:$0xff]  ;;  %1155 = vmatprep.mubr.msk.f32.mxu1 %vm1412_vm1, %v1413_v13 }
   0x2   :  { %v184_v2 = vld [vmem:[%s1687_s2] sm:$0xff]  ;;  %v1235_v3 = vpack.c.bf16 %v36_v1, %v35_v0  ;;  %v185_v5 = vld [vmem:[%s1687_s2 + $0x8] sm:$0xff]  ;;  %v38_v7 = vld [vmem:[%s1686_s1 + $0x18] sm:$0xff] }
   0x3   :  { %v1478_v8 = vpack.c.bf16 %v185_v5, %v184_v2  ;;  %v1239_v9 = vpack.c.bf16 %v38_v7, %v37_v6  ;;  %v27_v10 = vld [vmem:[%s1685_s0] sm:$0xff]  ;;  %v186_v11 = vld [vmem:[%s1687_s2 + $0x10] sm:$0xff]  ;;  %v187_v12 = vld [vmem:[%s1687_s2 + $0x18] sm:$0xff] }
   0x4   :  { %1236 = vmatprep.subr.bf16.mxu0 %v1235_v3  ;;  %1135 = vmatprep.mubr.msk.f32.mxu0 %vm46_vm0, %v27_v10 }
   0x5   :  { %14 = vsyncpa [#allocation6], 0  ;;  %1238 = vmatpush3.bf16.msra.mxu0 %v1235_v3  ;;  %1245 = vmatpush3.bf16.msra.mxu1 %v1478_v8  ;;  %v1493_v14 = vpack.c.bf16 %v187_v12, %v186_v11  ;;  %v28_v15 = vld [vmem:[%s1685_s0 + $0x8] sm:$0xff]  ;;  %v193_v16 = vld [vmem:[%s1689_s4] sm:$0xff]  ;;  %v188_v26 = vlaneseq  ;;  %s1415_s24 = smov 32   ;;  %s1417_s13 = smov [#allocation5]  }
   0x6   :  { %1240 = vmatprep.subr.bf16.mxu0 %v1239_v9  ;;  %1246 = vmatprep.subr.bf16.mxu1 %v1411_v4  ;;  %v1520_v17 = vld [vmem:[%s1688_s3] ss:$0 sm:$0xff]  ;;  %s1414_s3 = smov 64   ;;  %v29_v59 = vld [vmem:[%s1685_s0 + $0x10] sm:$0xff]  ;;  %v30_v60 = vld [vmem:[%s1685_s0 + $0x18] sm:$0xff]  ;;  %s1038_s14 = sshll.u32 %s1417_s13, 4  ;;  %s1039_s14 = int_to_ptr.vmem [resolvable:$true] %s1038_s14 }
   0x7   :  { %v189_v28 = vand.u32 127, %v188_v26  ;;  %v194_v33 = vld [vmem:[%s1690_s5] sm:$0xff]  ;;  %v32_v62 = vld [vmem:[%s1685_s0 + $0x28] sm:$0xff]  ;;  %v33_v63 = vld [vmem:[%s1685_s0 + $0x30] sm:$0xff]  ;;  %s1363_s15 = scalar_lea.vmem %s1039_s14, 128  ;;  %p1368_p1 = scmp.lt.s32.totalorder %s1039_s14, %s1039_s14 }
   0x8   :  { %v31_v61 = vld [vmem:[%s1685_s0 + $0x20] sm:$0xff]  ;;  %v34_v0 = vld [vmem:[%s1685_s0 + $0x38] sm:$0xff]  ;;  %s1416_s0 = smov 96   ;;  %p1364_p0 = scmp.ne.s32.totalorder %s1039_s14, %s1363_s15 }
   0x9   :  { %1242 = vmatpush3.bf16.msra.mxu0 %v1239_v9  ;;  %1248 = vmatpush3.bf16.msra.mxu1 %v1493_v14  ;;  %vm190_vm2 = vcmp.ge.s32.totalorder %v189_v28, 64  ;;  %vm191_vm3 = vcmp.lt.s32.totalorder %v189_v28, 96  ;;  %p1369_p2 = scmp.lt.s32.totalorder %s1363_s15, %s1363_s15 }
   0xa   :  { %1249 = vmatprep.subr.bf16.mxu1 %v1411_v4  ;;  %1255 = vmatprep.subr.bf16.mxu0 %v1411_v4  ;;  %vm1523_vm4 = vmand %vm190_vm2, %vm191_vm3 }
   0xb   :  { %p1370_p3 = por %p1369_p2, %p1368_p1 }
   0xc   :  { %1136 = vmatmul.mubr.msk.f32.vlgmr.msra.gmra.mrb[0].mxu0 %vm46_vm0, %v28_v15  ;;  %1156 = vmatmul.mubr.msk.f32.vlgmr.msra.gmra.mrb[0].mxu1 %vm46_vm0, %v193_v16 }
   0xd   :  { %1251 = vmatpush3.bf16.msra.mxu1 %v1478_v8  ;;  %1166 = vmatprep.mubr.msk.f32.mxu1 %vm1412_vm1, %v1413_v13  ;;  %p1371_p4 = pnand %p1370_p3, %p1364_p0 }
   0xe   :  { %1252 = vmatprep.subr.bf16.mxu1 %v1411_v4  ;;  %1257 = vmatpush3.bf16.msra.mxu0 %v1478_v8 }
   0xf   :  { %1258 = vmatprep.subr.bf16.mxu0 %v1411_v4  ;;  %1138 = vmatprep.mubr.msk.f32.mxu0 %vm46_vm0, %v29_v59 }
  0x10   :  { %1139 = vmatmul.mubr.msk.f32.gmra.mrb[2].mxu0 %vm46_vm0, %v30_v60 }
  0x11   :  { %1254 = vmatpush3.bf16.msra.mxu1 %v1493_v14  ;;  %1141 = vmatprep.mubr.msk.f32.mxu0 %vm46_vm0, %v31_v61 }
  0x12   :  { %1260 = vmatpush3.bf16.msra.mxu0 %v1493_v14  ;;  %1261 = vmatprep.subr.bf16.mxu1 %v1411_v4 }
  0x13   :  { %1267 = vmatprep.subr.bf16.mxu0 %v1411_v4 }
  0x14   :  { %1142 = vmatmul.mubr.msk.f32.gmra.mrb[4].mxu0 %vm46_vm0, %v32_v62 }
  0x15   :  { %1144 = vmatprep.mubr.msk.f32.mxu0 %vm46_vm0, %v33_v63 }
  0x18   :  { %1145 = vmatmul.mubr.msk.f32.gmra.mrb[6].mxu0 %vm46_vm0, %v34_v0 }
  0x19   :  { %1177 = vmatprep.mubr.msk.f32.mxu0 %vm1412_vm1, %v1413_v13 }
  0xdf   :  { %v1137_v18 = vpop.f32.mrb[0].mxu0  ;;  %v265_v19 = vpop.f32.mrb[0].mxu1 }
  0xe0   :  { %v137_v20 = vpop.f32.mrb[1].mxu0  ;;  %v1157_v21 = vpop.f32.mrb[1].mxu1  ;;  %v143_v44 = vadd.f32 %v1137_v18, %v1520_v17 }
  0xe1   :  { %v138_v22 = vadd.f32 %v1520_v17, %v137_v20 }
  0xe3   :  { %v266_v23 = vadd.f32 %v265_v19, %v138_v22  ;;  %v1140_v5 = vpop.f32.mrb[2].mxu0 }
  0xe4   :  { %v147_v6 = vpop.f32.mrb[3].mxu0 }
  0xe5   :  { %v1060_v24 = vmul.f32 -1.442695, %v266_v23  ;;  %v148_v15 = vadd.f32 %v1520_v17, %v147_v6 }
  0xe7   :  { %1299 = vpow2.f32 %v1060_v24  ;;  %v1577_v7 = vpop.f32.mrb[4].mxu0 }
  0xe8   :  { %1301 = vtanh.f32 %v266_v23  ;;  %v1579_v9 = vpop.f32.mrb[5].mxu0 }
  0xeb   :  { %v1581_v10 = vpop.f32.mrb[6].mxu0 }
  0xec   :  { %v1583_v11 = vpop.f32.mrb[7].mxu0 }
  0xf1   :  { %v1300_v25 = vpop.eup %1299 }
  0xf2   :  { %v273_v27 = vadd.f32 1.0, %v1300_v25  ;;  %v1302_v30 = vpop.eup %1301 }
  0xf4   :  { %1303 = vrcp.f32 %v273_v27 }
  0xfe   :  { %v1304_v31 = vpop.eup %1303 }
  0xff   :  { %v276_v32 = vsel %vm1523_vm4, %v1302_v30, %v1304_v31 }
 0x100   :  { %283 = vrot.lane.b32.xlu0 %v276_v32, %s1414_s3 }
 0x104   :  { %278 = vrot.lane.b32.xlu0 %v194_v33, %s1415_s24 }
 0x172   :  { %v284_v34 = vpop.permute.xlu0 %283 }
 0x173   :  { %v286_v35 = vmul.f32 %v284_v34, %v276_v32 }
 0x175   :  { %288 = vrot.lane.b32.xlu1 %v286_v35, %s1415_s24 }
 0x176   :  { %v279_v36 = vpop.permute.xlu0 %278 }
 0x177   :  { %v281_v37 = vmul.f32 %v279_v36, %v276_v32  ;;  %v153_v36 = vadd.f32 %v1140_v5, %v1520_v17 }
 0x1e7   :  { %v289_v38 = vpop.permute.xlu1 %288 }
 0x1e8   :  { %v291_v39 = vadd.f32 %v289_v38, %v281_v37 }
 0x1ea   :  { %1305 = vtanh.f32 %v291_v39 }
 0x1f4   :  { %v1306_v40 = vpop.eup %1305 }
 0x1f5   :  { %294 = vrot.lane.b32.xlu1 %v1306_v40, %s1414_s3 }
 0x267   :  { %v295_v41 = vpop.permute.xlu1 %294 }
 0x268   :  { %v297_v42 = vmul.f32 %v295_v41, %v276_v32 }
 0x26a   :  { %301 = vrot.lane.b32.xlu0 %v297_v42, %s1415_s24 }
 0x2dc   :  { %v302_v43 = vpop.permute.xlu0 %301 }
 0x2dd   :  { %1167 = vmatmul.mubr.msk.f32.vlgmr.msra.gmra.mrb[2].mxu1 %vm46_vm0, %v302_v43 }
 0x2de   :  { %1263 = vmatpush3.bf16.msra.mxu1 %v1478_v8  ;;  %1188 = vmatprep.mubr.msk.f32.mxu1 %vm1412_vm1, %v1413_v13 }
 0x2df   :  { %1264 = vmatprep.subr.bf16.mxu1 %v1411_v4 }
 0x2e2   :  { %1266 = vmatpush3.bf16.msra.mxu1 %v1493_v14 }
 0x2e3   :  { %1273 = vmatprep.subr.bf16.mxu1 %v1411_v4 }
 0x3b0   :  { %v371_v45 = vpop.f32.mrb[2].mxu1 }
 0x3b1   :  { %v372_v46 = vadd.f32 %v371_v45, %v143_v44  ;;  %v1168_v47 = vpop.f32.mrb[3].mxu1 }
 0x3b3   :  { %v1062_v48 = vmul.f32 -1.442695, %v372_v46 }
 0x3b5   :  { %1307 = vpow2.f32 %v1062_v48 }
 0x3b6   :  { %1309 = vtanh.f32 %v372_v46 }
 0x3bf   :  { %v1308_v49 = vpop.eup %1307 }
 0x3c0   :  { %v379_v50 = vadd.f32 1.0, %v1308_v49  ;;  %v1310_v51 = vpop.eup %1309 }
 0x3c2   :  { %1311 = vrcp.f32 %v379_v50 }
 0x3cc   :  { %v1312_v52 = vpop.eup %1311 }
 0x3cd   :  { %v382_v53 = vsel %vm1523_vm4, %v1310_v51, %v1312_v52 }
 0x3ce   :  { %385 = vrot.lane.b32.xlu1 %v382_v53, %s1414_s3  ;;  %v383_v56 = vmul.f32 %v382_v53, %v291_v39 }
 0x440   :  { %v386_v54 = vpop.permute.xlu1 %385 }
 0x441   :  { %v388_v55 = vmul.f32 %v386_v54, %v382_v53 }
 0x443   :  { %390 = vrot.lane.b32.xlu0 %v388_v55, %s1415_s24  ;;  %v158_v55 = vadd.f32 %v1520_v17, %v1579_v9 }
 0x4b5   :  { %v391_v57 = vpop.permute.xlu0 %390 }
 0x4b6   :  { %v393_v58 = vadd.f32 %v391_v57, %v383_v56 }
 0x4b8   :  { %1313 = vtanh.f32 %v393_v58 }
 0x4c2   :  { %v1314_v1 = vpop.eup %1313 }
 0x4c3   :  { %396 = vrot.lane.b32.xlu1 %v1314_v1, %s1414_s3 }
 0x535   :  { %v397_v2 = vpop.permute.xlu1 %396 }
 0x536   :  { %v399_v3 = vmul.f32 %v397_v2, %v382_v53 }
 0x538   :  { %403 = vrot.lane.b32.xlu0 %v399_v3, %s1415_s24 }
 0x5aa   :  { %v404_v12 = vpop.permute.xlu0 %403 }
 0x5ab   :  { %1178 = vmatmul.mubr.msk.f32.vlgmr.msra.gmra.mrb[8].mxu0 %vm46_vm0, %v404_v12 }
 0x5ac   :  { %1269 = vmatpush3.bf16.msra.mxu0 %v1478_v8  ;;  %1199 = vmatprep.mubr.msk.f32.mxu0 %vm1412_vm1, %v1413_v13 }
 0x5ad   :  { %1270 = vmatprep.subr.bf16.mxu0 %v1411_v4 }
 0x5b0   :  { %1272 = vmatpush3.bf16.msra.mxu0 %v1493_v14 }
 0x5b1   :  { %1279 = vmatprep.subr.bf16.mxu0 %v1411_v4 }
 0x67e   :  { %v473_v16 = vpop.f32.mrb[8].mxu0 }
 0x67f   :  { %v474_v18 = vadd.f32 %v473_v16, %v148_v15  ;;  %v1179_v19 = vpop.f32.mrb[9].mxu0 }
 0x681   :  { %v1064_v20 = vmul.f32 -1.442695, %v474_v18 }
 0x683   :  { %1315 = vpow2.f32 %v1064_v20 }
 0x684   :  { %1317 = vtanh.f32 %v474_v18  ;;  %v163_v18 = vadd.f32 %v1577_v7, %v1520_v17 }
 0x68d   :  { %v1316_v21 = vpop.eup %1315 }
 0x68e   :  { %v481_v22 = vadd.f32 1.0, %v1316_v21  ;;  %v1318_v23 = vpop.eup %1317 }
 0x690   :  { %1319 = vrcp.f32 %v481_v22 }
 0x69a   :  { %v1320_v24 = vpop.eup %1319 }
 0x69b   :  { %v484_v25 = vsel %vm1523_vm4, %v1318_v23, %v1320_v24 }
 0x69c   :  { %487 = vrot.lane.b32.xlu1 %v484_v25, %s1414_s3  ;;  %v485_v28 = vmul.f32 %v484_v25, %v393_v58 }
 0x70e   :  { %v488_v26 = vpop.permute.xlu1 %487 }
 0x70f   :  { %v490_v27 = vmul.f32 %v488_v26, %v484_v25 }
 0x711   :  { %492 = vrot.lane.b32.xlu0 %v490_v27, %s1415_s24 }
 0x783   :  { %v493_v30 = vpop.permute.xlu0 %492 }
 0x784   :  { %v495_v31 = vadd.f32 %v493_v30, %v485_v28 }
 0x786   :  { %1321 = vtanh.f32 %v495_v31 }
 0x790   :  { %v1322_v32 = vpop.eup %1321 }
 0x791   :  { %498 = vrot.lane.b32.xlu1 %v1322_v32, %s1414_s3 }
 0x803   :  { %v499_v33 = vpop.permute.xlu1 %498 }
 0x804   :  { %v501_v34 = vmul.f32 %v499_v33, %v484_v25  ;;  %v168_v33 = vadd.f32 %v1520_v17, %v1583_v11 }
 0x806   :  { %505 = vrot.lane.b32.xlu0 %v501_v34, %s1415_s24 }
 0x878   :  { %v506_v35 = vpop.permute.xlu0 %505 }
 0x879   :  { %1189 = vmatmul.mubr.msk.f32.vlgmr.msra.gmra.mrb[4].mxu1 %vm46_vm0, %v506_v35 }
 0x87a   :  { %1275 = vmatpush3.bf16.msra.mxu1 %v1478_v8  ;;  %1210 = vmatprep.mubr.msk.f32.mxu1 %vm1412_vm1, %v1413_v13 }
 0x87b   :  { %1276 = vmatprep.subr.bf16.mxu1 %v1411_v4 }
 0x87e   :  { %1278 = vmatpush3.bf16.msra.mxu1 %v1493_v14 }
 0x87f   :  { %1285 = vmatprep.subr.bf16.mxu1 %v1411_v4 }
 0x94c   :  { %v575_v37 = vpop.f32.mrb[4].mxu1 }
 0x94d   :  { %v576_v38 = vadd.f32 %v575_v37, %v153_v36  ;;  %v1190_v39 = vpop.f32.mrb[5].mxu1 }
 0x94f   :  { %v1066_v40 = vmul.f32 -1.442695, %v576_v38 }
 0x951   :  { %1323 = vpow2.f32 %v1066_v40 }
 0x952   :  { %1325 = vtanh.f32 %v576_v38 }
 0x95b   :  { %v1324_v41 = vpop.eup %1323 }
 0x95c   :  { %v583_v42 = vadd.f32 1.0, %v1324_v41  ;;  %v1326_v43 = vpop.eup %1325 }
 0x95e   :  { %1327 = vrcp.f32 %v583_v42 }
 0x968   :  { %v1328_v44 = vpop.eup %1327 }
 0x969   :  { %v586_v45 = vsel %vm1523_vm4, %v1326_v43, %v1328_v44 }
 0x96a   :  { %589 = vrot.lane.b32.xlu1 %v586_v45, %s1414_s3  ;;  %v587_v48 = vmul.f32 %v586_v45, %v495_v31 }
 0x9dc   :  { %v590_v46 = vpop.permute.xlu1 %589 }
 0x9dd   :  { %v592_v47 = vmul.f32 %v590_v46, %v586_v45 }
 0x9df   :  { %594 = vrot.lane.b32.xlu0 %v592_v47, %s1415_s24 }
 0xa51   :  { %v595_v49 = vpop.permute.xlu0 %594 }
 0xa52   :  { %v597_v50 = vadd.f32 %v595_v49, %v587_v48 }
 0xa54   :  { %1329 = vtanh.f32 %v597_v50 }
 0xa5e   :  { %v1330_v51 = vpop.eup %1329 }
 0xa5f   :  { %600 = vrot.lane.b32.xlu1 %v1330_v51, %s1414_s3  ;;  %v173_v51 = vadd.f32 %v1581_v10, %v1520_v17 }
 0xad1   :  { %v601_v52 = vpop.permute.xlu1 %600 }
 0xad2   :  { %v603_v53 = vmul.f32 %v601_v52, %v586_v45 }
 0xad4   :  { %607 = vrot.lane.b32.xlu0 %v603_v53, %s1415_s24 }
 0xb46   :  { %v608_v54 = vpop.permute.xlu0 %607 }
 0xb47   :  { %1200 = vmatmul.mubr.msk.f32.vlgmr.msra.gmra.mrb[10].mxu0 %vm46_vm0, %v608_v54 }
 0xb48   :  { %1281 = vmatpush3.bf16.msra.mxu0 %v1478_v8  ;;  %1221 = vmatprep.mubr.msk.f32.mxu0 %vm1412_vm1, %v1413_v13 }
 0xb49   :  { %1282 = vmatprep.subr.bf16.mxu0 %v1411_v4 }
 0xb4c   :  { %1284 = vmatpush3.bf16.msra.mxu0 %v1493_v14 }
 0xc1a   :  { %v677_v56 = vpop.f32.mrb[10].mxu0 }
 0xc1b   :  { %v678_v57 = vadd.f32 %v677_v56, %v158_v55  ;;  %v1201_v58 = vpop.f32.mrb[11].mxu0 }
 0xc1d   :  { %v1068_v59 = vmul.f32 -1.442695, %v678_v57 }
 0xc1f   :  { %1331 = vpow2.f32 %v1068_v59 }
 0xc20   :  { %1333 = vtanh.f32 %v678_v57 }
 0xc29   :  { %v1332_v60 = vpop.eup %1331 }
 0xc2a   :  { %v685_v61 = vadd.f32 1.0, %v1332_v60  ;;  %v1334_v62 = vpop.eup %1333 }
 0xc2c   :  { %1335 = vrcp.f32 %v685_v61 }
 0xc36   :  { %v1336_v63 = vpop.eup %1335 }
 0xc37   :  { %v688_v0 = vsel %vm1523_vm4, %v1334_v62, %v1336_v63 }
 0xc38   :  { %691 = vrot.lane.b32.xlu1 %v688_v0, %s1414_s3  ;;  %v689_v3 = vmul.f32 %v688_v0, %v597_v50 }
 0xcaa   :  { %v692_v1 = vpop.permute.xlu1 %691 }
 0xcab   :  { %v694_v2 = vmul.f32 %v692_v1, %v688_v0 }
 0xcad   :  { %696 = vrot.lane.b32.xlu0 %v694_v2, %s1415_s24 }
 0xd1f   :  { %v697_v5 = vpop.permute.xlu0 %696 }
 0xd20   :  { %v699_v6 = vadd.f32 %v697_v5, %v689_v3 }
 0xd22   :  { %1337 = vtanh.f32 %v699_v6 }
 0xd2c   :  { %v1338_v9 = vpop.eup %1337 }
 0xd2d   :  { %702 = vrot.lane.b32.xlu1 %v1338_v9, %s1414_s3 }
 0xd9f   :  { %v703_v12 = vpop.permute.xlu1 %702 }
 0xda0   :  { %v705_v15 = vmul.f32 %v703_v12, %v688_v0 }
 0xda2   :  { %709 = vrot.lane.b32.xlu0 %v705_v15, %s1415_s24 }
 0xe14   :  { %v710_v16 = vpop.permute.xlu0 %709 }
 0xe15   :  { %1211 = vmatmul.mubr.msk.f32.vlgmr.msra.gmra.mrb[6].mxu1 %vm46_vm0, %v710_v16 }
 0xe16   :  { %1287 = vmatpush3.bf16.msra.mxu1 %v1478_v8  ;;  %1232 = vmatprep.mubr.msk.f32.mxu1 %vm1412_vm1, %v1413_v13 }
 0xe17   :  { %1288 = vmatprep.subr.bf16.mxu1 %v1411_v4 }
 0xe1a   :  { %1290 = vmatpush3.bf16.msra.mxu1 %v1493_v14 }
 0xee8   :  { %v779_v19 = vpop.f32.mrb[6].mxu1 }
 0xee9   :  { %v780_v20 = vadd.f32 %v779_v19, %v163_v18  ;;  %v1212_v21 = vpop.f32.mrb[7].mxu1 }
 0xeeb   :  { %v1070_v22 = vmul.f32 -1.442695, %v780_v20 }
 0xeed   :  { %1339 = vpow2.f32 %v1070_v22 }
 0xeee   :  { %1341 = vtanh.f32 %v780_v20 }
 0xef7   :  { %v1340_v23 = vpop.eup %1339 }
 0xef8   :  { %v787_v24 = vadd.f32 1.0, %v1340_v23  ;;  %v1342_v8 = vpop.eup %1341 }
 0xefa   :  { %1343 = vrcp.f32 %v787_v24 }
 0xf04   :  { %v1344_v25 = vpop.eup %1343 }
 0xf05   :  { %v790_v13 = vsel %vm1523_vm4, %v1342_v8, %v1344_v25 }
 0xf06   :  { %793 = vrot.lane.b32.xlu1 %v790_v13, %s1414_s3  ;;  %v791_v7 = vmul.f32 %v790_v13, %v699_v6 }
 0xf78   :  { %v794_v4 = vpop.permute.xlu1 %793 }
 0xf79   :  { %v796_v14 = vmul.f32 %v794_v4, %v790_v13 }
 0xf7b   :  { %798 = vrot.lane.b32.xlu0 %v796_v14, %s1415_s24 }
 0xfed   :  { %v799_v26 = vpop.permute.xlu0 %798 }
 0xfee   :  { %v801_v27 = vadd.f32 %v799_v26, %v791_v7 }
 0xff0   :  { %1345 = vtanh.f32 %v801_v27 }
 0xffa   :  { %v1346_v28 = vpop.eup %1345 }
 0xffb   :  { %804 = vrot.lane.b32.xlu1 %v1346_v28, %s1414_s3 }
0x106d   :  { %v805_v30 = vpop.permute.xlu1 %804 }
0x106e   :  { %v807_v31 = vmul.f32 %v805_v30, %v790_v13 }
0x1070   :  { %811 = vrot.lane.b32.xlu0 %v807_v31, %s1415_s24 }
0x10e2   :  { %v812_v32 = vpop.permute.xlu0 %811 }
0x10e3   :  { %1222 = vmatmul.mubr.msk.f32.vlgmr.msra.gmra.mrb[12].mxu0 %vm46_vm0, %v812_v32 }
0x11b6   :  { %v881_v34 = vpop.f32.mrb[12].mxu0 }
0x11b7   :  { %v882_v35 = vadd.f32 %v881_v34, %v168_v33  ;;  %v1223_v36 = vpop.f32.mrb[13].mxu0 }
0x11b9   :  { %v1072_v37 = vmul.f32 -1.442695, %v882_v35 }
0x11bb   :  { %1347 = vpow2.f32 %v1072_v37 }
0x11bc   :  { %1349 = vtanh.f32 %v882_v35 }
0x11c5   :  { %v1348_v38 = vpop.eup %1347 }
0x11c6   :  { %v889_v39 = vadd.f32 1.0, %v1348_v38  ;;  %v1350_v40 = vpop.eup %1349 }
0x11c8   :  { %1351 = vrcp.f32 %v889_v39 }
0x11d2   :  { %v1352_v41 = vpop.eup %1351 }
0x11d3   :  { %v892_v42 = vsel %vm1523_vm4, %v1350_v40, %v1352_v41 }
0x11d4   :  { %895 = vrot.lane.b32.xlu1 %v892_v42, %s1414_s3  ;;  %v893_v11 = vmul.f32 %v892_v42, %v801_v27 }
0x1246   :  { %v896_v43 = vpop.permute.xlu1 %895 }
0x1247   :  { %v898_v44 = vmul.f32 %v896_v43, %v892_v42 }
0x1249   :  { %900 = vrot.lane.b32.xlu0 %v898_v44, %s1415_s24 }
0x12bb   :  { %v901_v45 = vpop.permute.xlu0 %900 }
0x12bc   :  { %v903_v46 = vadd.f32 %v901_v45, %v893_v11 }
0x12be   :  { %1353 = vtanh.f32 %v903_v46 }
0x12c8   :  { %v1354_v47 = vpop.eup %1353 }
0x12c9   :  { %906 = vrot.lane.b32.xlu1 %v1354_v47, %s1414_s3 }
0x133b   :  { %v907_v48 = vpop.permute.xlu1 %906 }
0x133c   :  { %v909_v49 = vmul.f32 %v907_v48, %v892_v42 }
0x133e   :  { %913 = vrot.lane.b32.xlu0 %v909_v49, %s1415_s24 }
0x13b0   :  { %v914_v50 = vpop.permute.xlu0 %913 }
0x13b1   :  { %1233 = vmatmul.mubr.msk.f32.vlgmr.msra.gmra.mrb[8].mxu1 %vm46_vm0, %v914_v50 }
0x1484   :  { %v983_v52 = vpop.f32.mrb[8].mxu1 }
0x1485   :  { %v984_v53 = vadd.f32 %v983_v52, %v173_v51  ;;  %v1234_v54 = vpop.f32.mrb[9].mxu1 }
0x1487   :  { %v1074_v55 = vmul.f32 -1.442695, %v984_v53 }
0x1489   :  { %1355 = vpow2.f32 %v1074_v55 }
0x148a   :  { %1357 = vtanh.f32 %v984_v53 }
0x1493   :  { %v1356_v56 = vpop.eup %1355 }
0x1494   :  { %v991_v57 = vadd.f32 1.0, %v1356_v56  ;;  %v1358_v58 = vpop.eup %1357 }
0x1496   :  { %1359 = vrcp.f32 %v991_v57 }
0x14a0   :  { %v1360_v59 = vpop.eup %1359 }
0x14a1   :  { %v994_v60 = vsel %vm1523_vm4, %v1358_v58, %v1360_v59 }
0x14a2   :  { %997 = vrot.lane.b32.xlu1 %v994_v60, %s1414_s3  ;;  %v995_v17 = vmul.f32 %v994_v60, %v903_v46 }
0x1514   :  { %v998_v61 = vpop.permute.xlu1 %997 }
0x1515   :  { %v1000_v62 = vmul.f32 %v998_v61, %v994_v60 }
0x1517   :  { %1002 = vrot.lane.b32.xlu0 %v1000_v62, %s1415_s24 }
0x1589   :  { %v1003_v10 = vpop.permute.xlu0 %1002 }
0x158a   :  { %v1005_v63 = vadd.f32 %v1003_v10, %v995_v17 }
0x158c   :  { %1361 = vtanh.f32 %v1005_v63 }
0x1596   :  { %v1362_v0 = vpop.eup %1361 }
0x1597   :  { %1008 = vrot.lane.b32.xlu1 %v1362_v0, %s1414_s3 }
0x159b   :  { %1018 = vrot.lane.b32.xlu1 %v1005_v63, %s1416_s0 }
0x1609   :  { %v1009_v1 = vpop.permute.xlu1 %1008 }
0x160a   :  { %v1011_v29 = vmul.f32 %v1009_v1, %v994_v60 }
0x160c   :  { %1013 = vrot.lane.b32.xlu0 %v1011_v29, %s1415_s24 }
0x160d   :  { %v1019_v2 = vpop.permute.xlu1 %1018 }
0x160e   :  { %1021 = vst.msk [vmem:[#allocation5] sm:$0xff] %vm46_vm0, %v1019_v2 }
0x160f   :  { %1374 = shalt.err (!%p1371_p4)
}
0x1610   :  { %s1375_s18 = scalar_lea.hbm %s1692_s7, 128 }
0x1611   :  { %p1376_p5 = scmp.ne.s32.totalorder %s1692_s7, %s1375_s18  ;;  %p1379_p6 = scmp.lt.u32.totalorder %s1375_s18, %s1692_s7 }
0x1613   :  { %p1381_p7 = pnand %p1379_p6, %p1376_p5 }
0x1615   :  { %1384 = shalt.err (!%p1381_p7)
}
0x1616   :  { %1041 = dma.vmem_to_hbm [thread:$0]  %s1039_s14, 128, %s1692_s7, [#allocation6]  }
0x1617   :  { %s1418_s3 = smov [#allocation3]  }
0x1618   :  { %s1028_s22 = sshll.u32 %s1418_s3, 4  ;;  %s1029_s22 = int_to_ptr.vmem [resolvable:$true] %s1028_s22 }
0x1619   :  { %s1385_s23 = scalar_lea.vmem %s1029_s22, 128  ;;  %p1390_p9 = scmp.lt.s32.totalorder %s1029_s22, %s1029_s22 }
0x161a   :  { %p1386_p8 = scmp.ne.s32.totalorder %s1029_s22, %s1385_s23  ;;  %p1391_p10 = scmp.lt.s32.totalorder %s1385_s23, %s1385_s23 }
0x161c   :  { %p1392_p11 = por %p1391_p10, %p1390_p9 }
0x161e   :  { %p1393_p12 = pnand %p1392_p11, %p1386_p8 }
0x167e   :  { %v1014_v3 = vpop.permute.xlu0 %1013 }
0x167f   :  { %1016 = vst.msk [vmem:[#allocation3] sm:$0xff] %vm46_vm0, %v1014_v3 }
0x1680   :  { %1396 = shalt.err (!%p1393_p12)
}
0x1681   :  { %s1397_s25 = scalar_lea.hbm %s1691_s6, 128 }
0x1682   :  { %p1398_p13 = scmp.ne.s32.totalorder %s1691_s6, %s1397_s25  ;;  %p1401_p0 = scmp.lt.u32.totalorder %s1397_s25, %s1691_s6 }
0x1684   :  { %p1403_p1 = pnand %p1401_p0, %p1398_p13 }
0x1686   :  { %1406 = shalt.err (!%p1403_p1)
}
0x1687   :  { %1031 = dma.vmem_to_hbm [thread:$0]  %s1029_s22, 128, %s1691_s6, [#allocation4]  }
0x1688   :  { %1407 = dma.done.wait [#allocation4], 128  }
0x1689   :  { %1408 = vsyncadd [#allocation4], 4294967168 }
0x168a   :  { %1409 = dma.done.wait [#allocation6], 128  }
0x168b   :  { %1410 = vsyncadd [#allocation6], 4294967168 }
0x168c   :  { %1048 = vsyncpa [#allocation4], 1 }
0x168d   :  { %1049 = vsyncpa [#allocation6], 1 }

</bundles_post_ra>
